<compile_context>
chip_gen: v7x
topology: tpu7x:2x2x1
jax: 0.10.0
libtpu: 0.0.40
codegen_flags: <defaults>
</compile_context>

<pallas_src>
import functools
import math

import jax
import jax.numpy as jnp
from jax import lax
from jax.experimental import pallas as pl
from jax.experimental.pallas import tpu as pltpu

_EPS = 1e-6
_LANES = 128
# mmdet delta2bbox wh_ratio_clip = 16/1000 -> clamp |dw|,|dh| <= log(1000/16)
_MAX_RATIO = abs(math.log(16.0 / 1000.0))


def _round_up(x, m):
    return -(-x // m) * m


def _recip(x):
    """1/x via EUP approx reciprocal + one Newton step (f32-accurate)."""
    r = pl.reciprocal(x, approx=True)
    return r * (2.0 - x * r)


def _iou_smooth_l1_kernel(pred_ref, target_ref, weight_ref, anchor_ref, out_ref,
                          *, blk, chunk, n_chunks, n_elems, beta, max_ratio):
    """One grid step: a (blk, 128) interleaved slab of each input.

    Lane j of a row holds coordinate (j % 4) of box (j // 4) within that row
    (native [N, 4] memory order), so per-coordinate math is fully lane-dense
    and per-box math lives on the group-start lanes (j % 4 == 0) after small
    lane rotations.
    """
    f32 = jnp.float32
    half_beta = 0.5 * beta
    inv_2beta = 0.5 / beta

    # Loop-invariant index planes (hoisted: JAX does not CSE broadcast_in_dim).
    lane = lax.broadcasted_iota(jnp.int32, (chunk, _LANES), 1)
    row = lax.broadcasted_iota(jnp.int32, (chunk, _LANES), 0)
    local_e = row * _LANES + lane
    grp_start = (lane & 3) == 0                       # coord-0 lane of each box
    block_base = pl.program_id(0) * (blk * _LANES)

    def _dn(x, k):
        # result[..., j] == x[..., (j + k) % 128]; the wrap only pollutes lanes
        # that are never group-start lanes, which are masked anyway.
        return pltpu.roll(x, _LANES - k, axis=1)

    def body(c, carry):
        loss_acc, cnt_acc = carry
        r0 = pl.multiple_of(c * chunk, chunk)
        p = pred_ref[pl.ds(r0, chunk), :]
        t = target_ref[pl.ds(r0, chunk), :]
        w = weight_ref[pl.ds(r0, chunk), :]
        a = anchor_ref[pl.ds(r0, chunk), :]

        e = block_base + c * (chunk * _LANES) + local_e
        valid = e < n_elems                           # masks pad AND OOB garbage
        box_ok = jnp.logical_and(valid, grp_start)

        # ---- smooth L1 per coordinate (dense: every lane is a coordinate) ----
        ad = jnp.abs(p - t)
        l = jnp.where(ad < beta, ad * ad * inv_2beta, ad - half_beta)
        lw = l * w

        # ---- per-box sums via lane rotations (XLU slot, not VALU) -------------
        s_l = l + _dn(l, 1) + _dn(l, 2) + _dn(l, 3)        # sum_c l_c
        s_lw = lw + _dn(lw, 1) + _dn(lw, 2) + _dn(lw, 3)   # sum_c l_c * w_c

        # ---- gather the 4 coords of each box onto its group-start lane --------
        p1, p2, p3 = _dn(p, 1), _dn(p, 2), _dn(p, 3)       # dy, dw, dh
        t1, t2, t3 = _dn(t, 1), _dn(t, 2), _dn(t, 3)
        a1, a2, a3 = _dn(a, 1), _dn(a, 2), _dn(a, 3)       # y1, x2, y2

        aw = a2 - a
        ah = a3 - a1
        acx = (a + a2) * 0.5
        acy = (a1 + a3) * 0.5
        haw = 0.5 * aw
        hah = 0.5 * ah

        def decode(dx, dy, dw, dh):
            dw = jnp.clip(dw, -max_ratio, max_ratio)
            dh = jnp.clip(dh, -max_ratio, max_ratio)
            return (acx + aw * dx, acy + ah * dy,
                    haw * jnp.exp(dw), hah * jnp.exp(dh))   # centers, half-sizes

        pcx, pcy, phw, phh = decode(p, p1, p2, p3)
        tcx, tcy, thw, thh = decode(t, t1, t2, t3)

        # ---- per-box axis-aligned IoU ------------------------------------------
        ix1 = jnp.maximum(pcx - phw, tcx - thw)
        ix2 = jnp.minimum(pcx + phw, tcx + thw)
        iy1 = jnp.maximum(pcy - phh, tcy - thh)
        iy2 = jnp.minimum(pcy + phh, tcy + thh)
        inter = jnp.maximum(ix2 - ix1, 0.0) * jnp.maximum(iy2 - iy1, 0.0)
        area_p = 4.0 * (phw * phh)          # half-sizes are non-negative
        area_t = 4.0 * (thw * thh)
        union = jnp.maximum(area_p + area_t - inter, _EPS)
        iou = inter * _recip(union)

        # ---- IoU-smooth reweighting, masked accumulation ------------------------
        factor = -jnp.log(jnp.maximum(iou, _EPS)) * _recip(s_l + _EPS)
        contrib = jnp.where(box_ok, s_lw * factor, 0.0)
        cnt = jnp.where(valid, (w > 0.0).astype(f32), 0.0)
        return loss_acc + contrib, cnt_acc + cnt

    zero = jnp.zeros((chunk, _LANES), f32)
    loss_acc, cnt_acc = lax.fori_loop(0, n_chunks, body, (zero, zero))
    out_ref[0, :chunk, :] = loss_acc
    out_ref[0, chunk:, :] = cnt_acc


def iou_smooth_l1_loss(pred, target, weight, bbox_par, *, beta=1.0,
                       loss_weight=1.0, block_rows=4096):
    """Scalar IoU-smooth-L1 loss. pred/target/weight/bbox_par: [N, 4]."""
    n, c = pred.shape
    assert c == 4
    assert target.shape == pred.shape == weight.shape == bbox_par.shape
    n_elems = 4 * n

    rows = max(-(-n_elems // _LANES), 1)       # ceil(4N / 128)
    pad = rows * _LANES - n_elems              # 0 <=> n % 32 == 0 (zero-copy view)

    def as_rows(x):
        flat = jnp.asarray(x, jnp.float32).reshape(-1)   # free row-major view
        if pad:
            flat = jnp.pad(flat, (0, pad))                # only copy in the pipeline
        return flat.reshape(rows, _LANES)

    pred_r, target_r, weight_r, anchor_r = map(
        as_rows, (pred, target, weight, bbox_par))

    # ---- block/grid selection: big DMA blocks, balanced, >=2 steps for v7x ----
    block_rows = max(8, _round_up(block_rows, 8))
    if rows < 8:
        blk, grid = rows, 1
    else:
        max_blk = min(block_rows, (rows // 8) * 8)
        grid = -(-rows // max_blk)
        if grid == 1 and rows >= 64:
            grid = 2                      # let ("parallel",) use both v7x cores
        blk = min(_round_up(-(-rows // grid), 8), (rows // 8) * 8)
        grid = -(-rows // blk)

    chunk = 8 if blk % 8 == 0 else blk    # inner vreg-resident row chunk
    n_chunks = blk // chunk

    kernel = functools.partial(
        _iou_smooth_l1_kernel, blk=blk, chunk=chunk, n_chunks=n_chunks,
        n_elems=n_elems, beta=float(beta), max_ratio=float(_MAX_RATIO))

    in_spec = pl.BlockSpec((blk, _LANES), lambda i: (i, 0))
    out_spec = pl.BlockSpec((1, 2 * chunk, _LANES), lambda i: (i, 0, 0))

    parts = pl.pallas_call(
        kernel,
        out_shape=jax.ShapeDtypeStruct((grid, 2 * chunk, _LANES), jnp.float32),
        grid_spec=pltpu.PrefetchScalarGridSpec(
            num_scalar_prefetch=0,
            grid=(grid,),
            in_specs=[in_spec, in_spec, in_spec, in_spec],
            out_specs=out_spec,
        ),
        compiler_params=pltpu.CompilerParams(
            dimension_semantics=("parallel",),
            vmem_limit_bytes=32 * 1024 * 1024,
        ),
        cost_estimate=pl.CostEstimate(
            flops=360 * n,
            transcendentals=28 * n,
            bytes_accessed=16 * n_elems + grid * 2 * chunk * _LANES * 4),
    )(pred_r, target_r, weight_r, anchor_r)

    loss = jnp.sum(parts[:, :chunk, :])
    cnt = jnp.sum(parts[:, chunk:, :])
    avg_factor = cnt / 4.0 + 1e-6
    return loss_weight * loss / avg_factor


class IoUSmoothL1Loss:
    """JAX/Pallas port of mmdet's IoUSmoothL1Loss (no learnable parameters)."""

    def __init__(self, beta=1.0, loss_weight=1.0):
        self.beta = beta
        self.loss_weight = loss_weight

    def __call__(self, pred, target, weight, bbox_par):
        return iou_smooth_l1_loss(pred, target, weight, bbox_par,
                                  beta=self.beta, loss_weight=self.loss_weight)


# ----------------------- pure-JAX reference (for checking) -------------------
def _reference(pred, target, weight, anchors, beta, loss_weight):
    diff = jnp.abs(pred - target)
    l = jnp.where(diff < beta, 0.5 * diff * diff / beta, diff - 0.5 * beta)

    ax1, ay1, ax2, ay2 = anchors[:, 0], anchors[:, 1], anchors[:, 2], anchors[:, 3]
    aw, ah = ax2 - ax1, ay2 - ay1
    acx, acy = (ax1 + ax2) * 0.5, (ay1 + ay2) * 0.5

    def decode(d):
        dw = jnp.clip(d[:, 2], -_MAX_RATIO, _MAX_RATIO)
        dh = jnp.clip(d[:, 3], -_MAX_RATIO, _MAX_RATIO)
        cx = acx + aw * d[:, 0]
        cy = acy + ah * d[:, 1]
        bw = aw * jnp.exp(dw)
        bh = ah * jnp.exp(dh)
        return cx - 0.5 * bw, cy - 0.5 * bh, cx + 0.5 * bw, cy + 0.5 * bh

    px1, py1, px2, py2 = decode(pred)
    tx1, ty1, tx2, ty2 = decode(target)
    inter = (jnp.maximum(jnp.minimum(px2, tx2) - jnp.maximum(px1, tx1), 0.0) *
             jnp.maximum(jnp.minimum(py2, ty2) - jnp.maximum(py1, ty1), 0.0))
    area_p = jnp.maximum(px2 - px1, 0.0) * jnp.maximum(py2 - py1, 0.0)
    area_t = jnp.maximum(tx2 - tx1, 0.0) * jnp.maximum(ty2 - ty1, 0.0)
    iou = inter / jnp.maximum(area_p + area_t - inter, _EPS)

    loss_sum = jnp.sum(l, axis=-1)
    factor = -jnp.log(jnp.maximum(iou, _EPS)) / (loss_sum + _EPS)
    total = jnp.sum(l * factor[:, None] * weight)
    avg_factor = jnp.sum(weight > 0).astype(jnp.float32) / 4.0 + 1e-6
    return loss_weight * total / avg_factor


def _make_inputs(key, n):
    k1, k2, k3, k4, k5, k6 = jax.random.split(key, 6)
    xy = jax.random.uniform(k1, (n, 2), jnp.float32, 0.0, 50.0)
    wh = jax.random.uniform(k2, (n, 2), jnp.float32, 5.0, 25.0)
    bbox_par = jnp.concatenate([xy, xy + wh], axis=-1)               # anchors
    pred = 0.1 * jax.random.normal(k3, (n, 4), jnp.float32)          # deltas
    target = 0.1 * jax.random.normal(k4, (n, 4), jnp.float32)        # deltas
    row_mask = (jax.random.uniform(k5, (n, 1)) > 0.25).astype(jnp.float32)
    weight = jax.random.uniform(k6, (n, 4), jnp.float32, 0.5, 1.5) * row_mask
    return pred, target, weight, bbox_par


if __name__ == "__main__":
    key = jax.random.PRNGKey(0)
    # (N, block_rows): small N exercising padding + in-kernel masking (grid=1),
    # and a zero-copy N with a forced small block -> 4 grid steps x 2 inner chunks.
    cases = [(100, 4096), (2048, 16)]

    pred = target = weight = bbox_par = None
    for idx, (n, brows) in enumerate(cases):
        key, sub = jax.random.split(key)
        pred, target, weight, bbox_par = _make_inputs(sub, n)
        loss_fn = jax.jit(functools.partial(
            iou_smooth_l1_loss, beta=1.0, loss_weight=1.0, block_rows=brows))
        out = jax.block_until_ready(loss_fn(pred, target, weight, bbox_par))
        ref = _reference(pred, target, weight, bbox_par, beta=1.0, loss_weight=1.0)
        assert jnp.isfinite(out), f"case {idx}: non-finite loss"
        assert jnp.allclose(out, ref, rtol=2e-4, atol=1e-5), (idx, out, ref)

    # Module-style call (mirrors the PyTorch forward signature).
    loss_mod = IoUSmoothL1Loss(beta=1.0, loss_weight=1.0)
    _ = jax.block_until_ready(loss_mod(pred, target, weight, bbox_par))

    print("KERNEL_OK")
</pallas_src>

<mosaic_0001>
module attributes {stable_mosaic.version = 11 : i64} {
  func.func @_iou_smooth_l1_kernel(%arg0: i32, %arg1: memref<4x128xf32, #tpu.memory_space<vmem>>, %arg2: memref<4x128xf32, #tpu.memory_space<vmem>>, %arg3: memref<4x128xf32, #tpu.memory_space<vmem>>, %arg4: memref<4x128xf32, #tpu.memory_space<vmem>>, %arg5: memref<1x8x128xf32, #tpu.memory_space<vmem>>) attributes {dimension_semantics = [#tpu.dimension_semantics<parallel>], iteration_bounds = array<i64: 1>, scalar_prefetch = 0 : i64, scratch_operands = 0 : i64, tpu.core_type = #tpu.core_type<tc>, window_params = [{transform_indices = @transform_0, window_bounds = array<i64: 4, 128>}, {transform_indices = @transform_1, window_bounds = array<i64: 4, 128>}, {transform_indices = @transform_2, window_bounds = array<i64: 4, 128>}, {transform_indices = @transform_3, window_bounds = array<i64: 4, 128>}, {transform_indices = @transform_4, window_bounds = array<i64: 1, 8, 128>}]} {
    %0 = tpu.iota {dimensions = array<i32: 1>} : vector<4x128xi32>
    %1 = tpu.iota {dimensions = array<i32: 0>} : vector<4x128xi32>
    %c128_i32 = arith.constant 128 : i32
    %2 = vector.broadcast %c128_i32 : i32 to vector<4x128xi32>
    %3 = arith.muli %1, %2 : vector<4x128xi32>
    %4 = arith.addi %3, %0 : vector<4x128xi32>
    %c3_i32 = arith.constant 3 : i32
    %5 = vector.broadcast %c3_i32 : i32 to vector<4x128xi32>
    %6 = arith.andi %0, %5 : vector<4x128xi32>
    %c0_i32 = arith.constant 0 : i32
    %7 = vector.broadcast %c0_i32 : i32 to vector<4x128xi32>
    %8 = arith.cmpi eq, %6, %7 : vector<4x128xi32>
    %c512_i32 = arith.constant 512 : i32
    %9 = arith.muli %arg0, %c512_i32 : i32
    %cst = arith.constant 0.000000e+00 : f32
    %10 = vector.broadcast %cst : f32 to vector<4x128xf32>
    %c0_i32_0 = arith.constant 0 : i32
    %c4_i32 = arith.constant 4 : i32
    %11 = arith.muli %c0_i32_0, %c4_i32 : i32
    %12 = tpu.assume_multiple %11, 4 : i32
    %13 = arith.index_cast %12 : i32 to index
    %c0 = arith.constant 0 : index
    %14 = vector.load %arg1[%13, %c0] : memref<4x128xf32, #tpu.memory_space<vmem>>, vector<4x128xf32>
    %15 = arith.index_cast %12 : i32 to index
    %c0_1 = arith.constant 0 : index
    %16 = vector.load %arg2[%15, %c0_1] : memref<4x128xf32, #tpu.memory_space<vmem>>, vector<4x128xf32>
    %17 = arith.index_cast %12 : i32 to index
    %c0_2 = arith.constant 0 : index
    %18 = vector.load %arg3[%17, %c0_2] : memref<4x128xf32, #tpu.memory_space<vmem>>, vector<4x128xf32>
    %19 = arith.index_cast %12 : i32 to index
    %c0_3 = arith.constant 0 : index
    %20 = vector.load %arg4[%19, %c0_3] : memref<4x128xf32, #tpu.memory_space<vmem>>, vector<4x128xf32>
    %c512_i32_4 = arith.constant 512 : i32
    %21 = arith.muli %c0_i32_0, %c512_i32_4 : i32
    %22 = arith.addi %9, %21 : i32
    %23 = vector.broadcast %22 : i32 to vector<4x128xi32>
    %24 = arith.addi %23, %4 : vector<4x128xi32>
    %c400_i32 = arith.constant 400 : i32
    %25 = vector.broadcast %c400_i32 : i32 to vector<4x128xi32>
    %26 = arith.cmpi slt, %24, %25 : vector<4x128xi32>
    %27 = arith.andi %26, %8 : vector<4x128xi1>
    %28 = arith.subf %14, %16 : vector<4x128xf32>
    %29 = math.absf %28 : vector<4x128xf32>
    %cst_5 = arith.constant 1.000000e+00 : f32
    %30 = vector.broadcast %cst_5 : f32 to vector<4x128xf32>
    %31 = arith.cmpf olt, %29, %30 : vector<4x128xf32>
    %32 = arith.mulf %29, %29 : vector<4x128xf32>
    %cst_6 = arith.constant 5.000000e-01 : f32
    %33 = vector.broadcast %cst_6 : f32 to vector<4x128xf32>
    %34 = arith.mulf %32, %33 : vector<4x128xf32>
    %cst_7 = arith.constant 5.000000e-01 : f32
    %35 = vector.broadcast %cst_7 : f32 to vector<4x128xf32>
    %36 = arith.subf %29, %35 : vector<4x128xf32>
    %37 = arith.select %31, %34, %36 : vector<4x128xi1>, vector<4x128xf32>
    %38 = arith.mulf %37, %18 : vector<4x128xf32>
    %c127_i32 = arith.constant 127 : i32
    %39 = tpu.dynamic_rotate %37 by %c127_i32 dim 1 : vector<4x128xf32>, i32 -> vector<4x128xf32>
    %40 = arith.addf %37, %39 : vector<4x128xf32>
    %c126_i32 = arith.constant 126 : i32
    %41 = tpu.dynamic_rotate %37 by %c126_i32 dim 1 : vector<4x128xf32>, i32 -> vector<4x128xf32>
    %42 = arith.addf %40, %41 : vector<4x128xf32>
    %c125_i32 = arith.constant 125 : i32
    %43 = tpu.dynamic_rotate %37 by %c125_i32 dim 1 : vector<4x128xf32>, i32 -> vector<4x128xf32>
    %44 = arith.addf %42, %43 : vector<4x128xf32>
    %c127_i32_8 = arith.constant 127 : i32
    %45 = tpu.dynamic_rotate %38 by %c127_i32_8 dim 1 : vector<4x128xf32>, i32 -> vector<4x128xf32>
    %46 = arith.addf %38, %45 : vector<4x128xf32>
    %c126_i32_9 = arith.constant 126 : i32
    %47 = tpu.dynamic_rotate %38 by %c126_i32_9 dim 1 : vector<4x128xf32>, i32 -> vector<4x128xf32>
    %48 = arith.addf %46, %47 : vector<4x128xf32>
    %c125_i32_10 = arith.constant 125 : i32
    %49 = tpu.dynamic_rotate %38 by %c125_i32_10 dim 1 : vector<4x128xf32>, i32 -> vector<4x128xf32>
    %50 = arith.addf %48, %49 : vector<4x128xf32>
    %c127_i32_11 = arith.constant 127 : i32
    %51 = tpu.dynamic_rotate %14 by %c127_i32_11 dim 1 : vector<4x128xf32>, i32 -> vector<4x128xf32>
    %c126_i32_12 = arith.constant 126 : i32
    %52 = tpu.dynamic_rotate %14 by %c126_i32_12 dim 1 : vector<4x128xf32>, i32 -> vector<4x128xf32>
    %c125_i32_13 = arith.constant 125 : i32
    %53 = tpu.dynamic_rotate %14 by %c125_i32_13 dim 1 : vector<4x128xf32>, i32 -> vector<4x128xf32>
    %c127_i32_14 = arith.constant 127 : i32
    %54 = tpu.dynamic_rotate %16 by %c127_i32_14 dim 1 : vector<4x128xf32>, i32 -> vector<4x128xf32>
    %c126_i32_15 = arith.constant 126 : i32
    %55 = tpu.dynamic_rotate %16 by %c126_i32_15 dim 1 : vector<4x128xf32>, i32 -> vector<4x128xf32>
    %c125_i32_16 = arith.constant 125 : i32
    %56 = tpu.dynamic_rotate %16 by %c125_i32_16 dim 1 : vector<4x128xf32>, i32 -> vector<4x128xf32>
    %c127_i32_17 = arith.constant 127 : i32
    %57 = tpu.dynamic_rotate %20 by %c127_i32_17 dim 1 : vector<4x128xf32>, i32 -> vector<4x128xf32>
    %c126_i32_18 = arith.constant 126 : i32
    %58 = tpu.dynamic_rotate %20 by %c126_i32_18 dim 1 : vector<4x128xf32>, i32 -> vector<4x128xf32>
    %c125_i32_19 = arith.constant 125 : i32
    %59 = tpu.dynamic_rotate %20 by %c125_i32_19 dim 1 : vector<4x128xf32>, i32 -> vector<4x128xf32>
    %60 = arith.subf %58, %20 : vector<4x128xf32>
    %61 = arith.subf %59, %57 : vector<4x128xf32>
    %62 = arith.addf %20, %58 : vector<4x128xf32>
    %cst_20 = arith.constant 5.000000e-01 : f32
    %63 = vector.broadcast %cst_20 : f32 to vector<4x128xf32>
    %64 = arith.mulf %62, %63 : vector<4x128xf32>
    %65 = arith.addf %57, %59 : vector<4x128xf32>
    %cst_21 = arith.constant 5.000000e-01 : f32
    %66 = vector.broadcast %cst_21 : f32 to vector<4x128xf32>
    %67 = arith.mulf %65, %66 : vector<4x128xf32>
    %cst_22 = arith.constant 5.000000e-01 : f32
    %68 = vector.broadcast %cst_22 : f32 to vector<4x128xf32>
    %69 = arith.mulf %68, %60 : vector<4x128xf32>
    %cst_23 = arith.constant 5.000000e-01 : f32
    %70 = vector.broadcast %cst_23 : f32 to vector<4x128xf32>
    %71 = arith.mulf %70, %61 : vector<4x128xf32>
    %cst_24 = arith.constant -4.13516665 : f32
    %cst_25 = arith.constant 4.13516665 : f32
    %72 = vector.broadcast %cst_24 : f32 to vector<4x128xf32>
    %73 = arith.maximumf %72, %52 : vector<4x128xf32>
    %74 = vector.broadcast %cst_25 : f32 to vector<4x128xf32>
    %75 = arith.minimumf %74, %73 : vector<4x128xf32>
    %cst_26 = arith.constant -4.13516665 : f32
    %cst_27 = arith.constant 4.13516665 : f32
    %76 = vector.broadcast %cst_26 : f32 to vector<4x128xf32>
    %77 = arith.maximumf %76, %53 : vector<4x128xf32>
    %78 = vector.broadcast %cst_27 : f32 to vector<4x128xf32>
    %79 = arith.minimumf %78, %77 : vector<4x128xf32>
    %80 = arith.mulf %60, %14 : vector<4x128xf32>
    %81 = arith.addf %64, %80 : vector<4x128xf32>
    %82 = arith.mulf %61, %51 : vector<4x128xf32>
    %83 = arith.addf %67, %82 : vector<4x128xf32>
    %84 = math.exp %75 : vector<4x128xf32>
    %85 = arith.mulf %69, %84 : vector<4x128xf32>
    %86 = math.exp %79 : vector<4x128xf32>
    %87 = arith.mulf %71, %86 : vector<4x128xf32>
    %cst_28 = arith.constant -4.13516665 : f32
    %cst_29 = arith.constant 4.13516665 : f32
    %88 = vector.broadcast %cst_28 : f32 to vector<4x128xf32>
    %89 = arith.maximumf %88, %55 : vector<4x128xf32>
    %90 = vector.broadcast %cst_29 : f32 to vector<4x128xf32>
    %91 = arith.minimumf %90, %89 : vector<4x128xf32>
    %cst_30 = arith.constant -4.13516665 : f32
    %cst_31 = arith.constant 4.13516665 : f32
    %92 = vector.broadcast %cst_30 : f32 to vector<4x128xf32>
    %93 = arith.maximumf %92, %56 : vector<4x128xf32>
    %94 = vector.broadcast %cst_31 : f32 to vector<4x128xf32>
    %95 = arith.minimumf %94, %93 : vector<4x128xf32>
    %96 = arith.mulf %60, %16 : vector<4x128xf32>
    %97 = arith.addf %64, %96 : vector<4x128xf32>
    %98 = arith.mulf %61, %54 : vector<4x128xf32>
    %99 = arith.addf %67, %98 : vector<4x128xf32>
    %100 = math.exp %91 : vector<4x128xf32>
    %101 = arith.mulf %69, %100 : vector<4x128xf32>
    %102 = math.exp %95 : vector<4x128xf32>
    %103 = arith.mulf %71, %102 : vector<4x128xf32>
    %104 = arith.subf %81, %85 : vector<4x128xf32>
    %105 = arith.subf %97, %101 : vector<4x128xf32>
    %106 = arith.maximumf %104, %105 : vector<4x128xf32>
    %107 = arith.addf %81, %85 : vector<4x128xf32>
    %108 = arith.addf %97, %101 : vector<4x128xf32>
    %109 = arith.minimumf %107, %108 : vector<4x128xf32>
    %110 = arith.subf %83, %87 : vector<4x128xf32>
    %111 = arith.subf %99, %103 : vector<4x128xf32>
    %112 = arith.maximumf %110, %111 : vector<4x128xf32>
    %113 = arith.addf %83, %87 : vector<4x128xf32>
    %114 = arith.addf %99, %103 : vector<4x128xf32>
    %115 = arith.minimumf %113, %114 : vector<4x128xf32>
    %116 = arith.subf %109, %106 : vector<4x128xf32>
    %cst_32 = arith.constant 0.000000e+00 : f32
    %117 = vector.broadcast %cst_32 : f32 to vector<4x128xf32>
    %118 = arith.maximumf %116, %117 : vector<4x128xf32>
    %119 = arith.subf %115, %112 : vector<4x128xf32>
    %cst_33 = arith.constant 0.000000e+00 : f32
    %120 = vector.broadcast %cst_33 : f32 to vector<4x128xf32>
    %121 = arith.maximumf %119, %120 : vector<4x128xf32>
    %122 = arith.mulf %118, %121 : vector<4x128xf32>
    %123 = arith.mulf %85, %87 : vector<4x128xf32>
    %cst_34 = arith.constant 4.000000e+00 : f32
    %124 = vector.broadcast %cst_34 : f32 to vector<4x128xf32>
    %125 = arith.mulf %124, %123 : vector<4x128xf32>
    %126 = arith.mulf %101, %103 : vector<4x128xf32>
    %cst_35 = arith.constant 4.000000e+00 : f32
    %127 = vector.broadcast %cst_35 : f32 to vector<4x128xf32>
    %128 = arith.mulf %127, %126 : vector<4x128xf32>
    %129 = arith.addf %125, %128 : vector<4x128xf32>
    %130 = arith.subf %129, %122 : vector<4x128xf32>
    %cst_36 = arith.constant 9.99999997E-7 : f32
    %131 = vector.broadcast %cst_36 : f32 to vector<4x128xf32>
    %132 = arith.maximumf %130, %131 : vector<4x128xf32>
    %133 = tpu.reciprocal %132 {approx = true} : vector<4x128xf32> -> vector<4x128xf32>
    %134 = arith.mulf %132, %133 : vector<4x128xf32>
    %cst_37 = arith.constant 2.000000e+00 : f32
    %135 = vector.broadcast %cst_37 : f32 to vector<4x128xf32>
    %136 = arith.subf %135, %134 : vector<4x128xf32>
    %137 = arith.mulf %133, %136 : vector<4x128xf32>
    %138 = arith.mulf %122, %137 : vector<4x128xf32>
    %cst_38 = arith.constant 9.99999997E-7 : f32
    %139 = vector.broadcast %cst_38 : f32 to vector<4x128xf32>
    %140 = arith.maximumf %138, %139 : vector<4x128xf32>
    %141 = math.log %140 : vector<4x128xf32>
    %cst_39 = arith.constant 0.000000e+00 : f32
    %142 = vector.broadcast %cst_39 : f32 to vector<4x128xf32>
    %143 = arith.subf %142, %141 : vector<4x128xf32>
    %cst_40 = arith.constant 9.99999997E-7 : f32
    %144 = vector.broadcast %cst_40 : f32 to vector<4x128xf32>
    %145 = arith.addf %44, %144 : vector<4x128xf32>
    %146 = tpu.reciprocal %145 {approx = true} : vector<4x128xf32> -> vector<4x128xf32>
    %147 = arith.mulf %145, %146 : vector<4x128xf32>
    %cst_41 = arith.constant 2.000000e+00 : f32
    %148 = vector.broadcast %cst_41 : f32 to vector<4x128xf32>
    %149 = arith.subf %148, %147 : vector<4x128xf32>
    %150 = arith.mulf %146, %149 : vector<4x128xf32>
    %151 = arith.mulf %143, %150 : vector<4x128xf32>
    %152 = arith.mulf %50, %151 : vector<4x128xf32>
    %cst_42 = arith.constant 0.000000e+00 : f32
    %153 = vector.broadcast %cst_42 : f32 to vector<4x128xf32>
    %154 = arith.select %27, %152, %153 : vector<4x128xi1>, vector<4x128xf32>
    %cst_43 = arith.constant 0.000000e+00 : f32
    %155 = vector.broadcast %cst_43 : f32 to vector<4x128xf32>
    %156 = arith.cmpf ogt, %18, %155 : vector<4x128xf32>
    %157 = arith.extui %156 : vector<4x128xi1> to vector<4x128xi32>
    %158 = arith.sitofp %157 : vector<4x128xi32> to vector<4x128xf32>
    %cst_44 = arith.constant 0.000000e+00 : f32
    %159 = vector.broadcast %cst_44 : f32 to vector<4x128xf32>
    %160 = arith.select %26, %158, %159 : vector<4x128xi1>, vector<4x128xf32>
    %161 = arith.addf %10, %154 : vector<4x128xf32>
    %162 = arith.addf %10, %160 : vector<4x128xf32>
    %c1_i32 = arith.constant 1 : i32
    %c0_45 = arith.constant 0 : index
    %c0_46 = arith.constant 0 : index
    %c0_47 = arith.constant 0 : index
    %163 = vector.load %arg5[%c0_45, %c0_46, %c0_47] : memref<1x8x128xf32, #tpu.memory_space<vmem>>, vector<1x4x128xf32>
    %164 = vector.shape_cast %163 : vector<1x4x128xf32> to vector<4x128xf32>
    %165 = vector.shape_cast %161 : vector<4x128xf32> to vector<1x4x128xf32>
    tpu.vector_store %arg5[%c0_45, %c0_46, %c0_47], %165 {strides = array<i32>} : memref<1x8x128xf32, #tpu.memory_space<vmem>>, vector<1x4x128xf32>,
    %c0_48 = arith.constant 0 : index
    %c4 = arith.constant 4 : index
    %c0_49 = arith.constant 0 : index
    %166 = vector.load %arg5[%c0_48, %c4, %c0_49] : memref<1x8x128xf32, #tpu.memory_space<vmem>>, vector<1x4x128xf32>
    %167 = vector.shape_cast %166 : vector<1x4x128xf32> to vector<4x128xf32>
    %168 = vector.shape_cast %162 : vector<4x128xf32> to vector<1x4x128xf32>
    tpu.vector_store %arg5[%c0_48, %c4, %c0_49], %168 {strides = array<i32>} : memref<1x8x128xf32, #tpu.memory_space<vmem>>, vector<1x4x128xf32>,
    return
  }
  func.func @transform_0(%arg0: i32) -> (i32, i32) {
    %c0_i32 = arith.constant 0 : i32
    %c0_i32_0 = arith.constant 0 : i32
    return %arg0, %c0_i32 : i32, i32
  }
  func.func @transform_1(%arg0: i32) -> (i32, i32) {
    %c0_i32 = arith.constant 0 : i32
    %c0_i32_0 = arith.constant 0 : i32
    return %arg0, %c0_i32 : i32, i32
  }
  func.func @transform_2(%arg0: i32) -> (i32, i32) {
    %c0_i32 = arith.constant 0 : i32
    %c0_i32_0 = arith.constant 0 : i32
    return %arg0, %c0_i32 : i32, i32
  }
  func.func @transform_3(%arg0: i32) -> (i32, i32) {
    %c0_i32 = arith.constant 0 : i32
    %c0_i32_0 = arith.constant 0 : i32
    return %arg0, %c0_i32 : i32, i32
  }
  func.func @transform_4(%arg0: i32) -> (i32, i32, i32) {
    %c0_i32 = arith.constant 0 : i32
    %c0_i32_0 = arith.constant 0 : i32
    %c0_i32_1 = arith.constant 0 : i32
    return %arg0, %c0_i32, %c0_i32_0 : i32, i32, i32
  }
}

</mosaic_0001>

<bundles_post_ra>
// kernel: iou_smooth_l1_loss.1
= control target key start
LH: loop header
LB: loop body
LE: loop exit
PB: predicated region body
PF: predicated region fallthrough
CT: control target
= control target key end

     0   :  { %s191_s19 = smov 126   ;;  %s192_s20 = smov 125   ;;  %v17_v11 = vlaneseq  ;;  %v194_v18 = vmov 0.0   ;;  %s271_s1 = inlined_call_operand.vmem [shape: f32[4,128], index: 1, kind: input, shape index: {}]   ;;  %s272_s0 = inlined_call_operand.vmem [shape: f32[4,128], index: 0, kind: input, shape index: {}]   ;;  %s273_s3 = inlined_call_operand.vmem [shape: f32[4,128], index: 3, kind: input, shape index: {}]   ;;  %s274_s2 = inlined_call_operand.vmem [shape: f32[4,128], index: 2, kind: input, shape index: {}]   ;;  %s275_s4 = inlined_call_operand.vmem [shape: f32[1,8,128], index: 4, kind: output, shape index: {}]  }
   0x1   :  { %v223_v0 = vld [vmem:[%s271_s1] sm:$0xf] }
   0x2   :  { %v228_v1 = vld [vmem:[%s272_s0] sm:$0xf]  ;;  %68 = vrot.lane.b32.xlu1 %v223_v0, %s191_s19  ;;  %s193_s0 = smov 127   ;;  %v18_v12 = vand.u32 127, %v17_v11  ;;  %v20_v13 = vshrl.u32 %v17_v11, 7 }
   0x3   :  { %62 = vrot.lane.b32.xlu0 %v228_v1, %s191_s19  ;;  %v34_v2 = vsub.f32 %v228_v1, %v223_v0  ;;  %v29_v4 = vld [vmem:[%s273_s3] sm:$0xf] }
   0x4   :  { %v28_v9 = vld [vmem:[%s274_s2] sm:$0xf]  ;;  %v21_v14 = vmul.u32 128, %v20_v13  ;;  %v23_v15 = vand.u32 3, %v18_v12 }
   0x5   :  { %v35_v3 = vand.u32 2147483647, %v34_v2  ;;  %vm155_vm4 = vcmp.gt.f32.partialorder %v28_v9, 0.0 }
   0x6   :  { %70 = vrot.lane.b32.xlu1 %v223_v0, %s192_s20  ;;  %v22_v16 = vadd.s32 %v21_v14, %v18_v12  ;;  %vm24_vm1 = vcmp.eq.s32.totalorder %v23_v15, 0  ;;  %v172_v19 = vsel %vm155_vm4, 1.0, %v194_v18 }
   0x7   :  { %64 = vrot.lane.b32.xlu0 %v228_v1, %s192_s20  ;;  %v37_v5 = vmul.f32 %v35_v3, %v35_v3  ;;  %v167_v7 = vadd.f32 -0.5, %v35_v3  ;;  %vm36_vm0 = vcmp.lt.f32.partialorder %v35_v3, 1.0 }
   0x8   :  { %vm32_vm2 = vcmp.lt.s32.totalorder %v22_v16, 400 }
   0x9   :  { %v38_v6 = vmul.f32 0.5, %v37_v5  ;;  %vm255_vm3 = vmand %vm32_vm2, %vm24_vm1  ;;  %v158_v20 = vsel %vm32_vm2, %v172_v19, 0.0 }
   0xa   :  { %74 = vrot.lane.b32.xlu1 %v29_v4, %s191_s19  ;;  %162 = vst [vmem:[%s275_s4 + $0x4] sm:$0xf] %v158_v20 }
   0xb   :  { %72 = vrot.lane.b32.xlu0 %v29_v4, %s193_s0  ;;  %v240_v8 = vsel %vm36_vm0, %v38_v6, %v167_v7 }
   0xc   :  { %v250_v10 = vmul.f32 %v240_v8, %v28_v9 }
   0xe   :  { %60 = vrot.lane.b32.xlu1 %v228_v1, %s193_s0 }
   0xf   :  { %76 = vrot.lane.b32.xlu0 %v29_v4, %s192_s20 }
  0x12   :  { %42 = vrot.lane.b32.xlu1 %v240_v8, %s193_s0 }
  0x13   :  { %66 = vrot.lane.b32.xlu0 %v223_v0, %s193_s0 }
  0x16   :  { %48 = vrot.lane.b32.xlu1 %v240_v8, %s192_s20 }
  0x17   :  { %45 = vrot.lane.b32.xlu0 %v240_v8, %s191_s19 }
  0x1a   :  { %54 = vrot.lane.b32.xlu1 %v250_v10, %s191_s19 }
  0x1b   :  { %51 = vrot.lane.b32.xlu0 %v250_v10, %s193_s0 }
  0x1f   :  { %57 = vrot.lane.b32.xlu0 %v250_v10, %s192_s20 }
  0x74   :  { %v69_v21 = vpop.permute.xlu1 %68 }
  0x75   :  { %v63_v22 = vpop.permute.xlu0 %62  ;;  %v170_v23 = vclamps-f32 %v69_v21, 4.1351666 }
  0x76   :  { %v168_v24 = vclamps-f32 %v63_v22, 4.1351666 }
  0x77   :  { %v108_v25 = vmul.f32 1.442695, %v170_v23 }
  0x78   :  { %v94_v26 = vmul.f32 1.442695, %v168_v24  ;;  %v71_v27 = vpop.permute.xlu1 %70 }
  0x79   :  { %v65_v28 = vpop.permute.xlu0 %64  ;;  %177 = vpow2.f32 %v108_v25  ;;  %v171_v29 = vclamps-f32 %v71_v27, 4.1351666 }
  0x7a   :  { %v169_v30 = vclamps-f32 %v65_v28, 4.1351666  ;;  %179 = vpow2.f32 %v94_v26 }
  0x7b   :  { %v111_v31 = vmul.f32 1.442695, %v171_v29 }
  0x7c   :  { %v97_v32 = vmul.f32 1.442695, %v169_v30  ;;  %v75_v34 = vpop.permute.xlu1 %74 }
  0x7d   :  { %v73_v33 = vpop.permute.xlu0 %72  ;;  %181 = vpow2.f32 %v111_v31  ;;  %v78_v35 = vsub.f32 %v75_v34, %v29_v4  ;;  %v80_v36 = vadd.f32 %v75_v34, %v29_v4 }
  0x7e   :  { %183 = vpow2.f32 %v97_v32 }
  0x7f   :  { %v81_v37 = vmul.f32 0.5, %v80_v36  ;;  %v90_v38 = vmul.f32 %v78_v35, %v228_v1  ;;  %v104_v39 = vmul.f32 %v78_v35, %v223_v0  ;;  %v84_v40 = vmul.f32 0.5, %v78_v35 }
  0x80   :  { %v61_v45 = vpop.permute.xlu1 %60 }
  0x81   :  { %v77_v41 = vpop.permute.xlu0 %76  ;;  %v105_v44 = vadd.f32 %v104_v39, %v81_v37  ;;  %v91_v47 = vadd.f32 %v90_v38, %v81_v37 }
  0x82   :  { %v79_v42 = vsub.f32 %v77_v41, %v73_v33  ;;  %v82_v43 = vadd.f32 %v77_v41, %v73_v33 }
  0x83   :  { %v178_v46 = vpop.eup %177 }
  0x84   :  { %v180_v48 = vpop.eup %179  ;;  %v110_v49 = vmul.f32 %v178_v46, %v84_v40  ;;  %v83_v52 = vmul.f32 0.5, %v82_v43  ;;  %v92_v53 = vmul.f32 %v79_v42, %v61_v45  ;;  %v85_v57 = vmul.f32 0.5, %v79_v42  ;;  %v43_v23 = vpop.permute.xlu1 %42 }
  0x85   :  { %v67_v50 = vpop.permute.xlu0 %66  ;;  %v96_v51 = vmul.f32 %v180_v48, %v84_v40  ;;  %v44_v25 = vadd.f32 %v43_v23, %v240_v8 }
  0x86   :  { %v106_v54 = vmul.f32 %v79_v42, %v67_v50  ;;  %v115_v55 = vsub.f32 %v105_v44, %v110_v49  ;;  %v118_v56 = vadd.f32 %v110_v49, %v105_v44  ;;  %v93_v3 = vadd.f32 %v92_v53, %v83_v52 }
  0x87   :  { %v182_v58 = vpop.eup %181  ;;  %v114_v59 = vsub.f32 %v91_v47, %v96_v51  ;;  %v117_v60 = vadd.f32 %v96_v51, %v91_v47 }
  0x88   :  { %v107_v61 = vadd.f32 %v106_v54, %v83_v52  ;;  %v184_v62 = vpop.eup %183  ;;  %v113_v63 = vmul.f32 %v182_v58, %v85_v57  ;;  %v49_v29 = vpop.permute.xlu1 %48 }
  0x89   :  { %v116_v0 = vmax.f32 %v114_v59, %v115_v55  ;;  %v119_v1 = vmin.f32 %v117_v60, %v118_v56  ;;  %v99_v2 = vmul.f32 %v184_v62, %v85_v57  ;;  %v46_v27 = vpop.permute.xlu0 %45 }
  0x8a   :  { %v121_v4 = vsub.f32 %v107_v61, %v113_v63  ;;  %v124_v5 = vadd.f32 %v113_v63, %v107_v61  ;;  %v133_v7 = vmul.f32 %v113_v63, %v110_v49  ;;  %v47_v28 = vadd.f32 %v46_v27, %v44_v25 }
  0x8b   :  { %v131_v6 = vmul.f32 %v99_v2, %v96_v51  ;;  %v120_v9 = vsub.f32 %v93_v3, %v99_v2  ;;  %v123_v11 = vadd.f32 %v99_v2, %v93_v3  ;;  %v126_v12 = vsub.f32 %v119_v1, %v116_v0 }
  0x8c   :  { %v134_v16 = vmul.f32 4.0, %v133_v7  ;;  %v50_v30 = vadd.f32 %v49_v29, %v47_v28  ;;  %v55_v41 = vpop.permute.xlu1 %54 }
  0x8d   :  { %v122_v13 = vmax.f32 %v120_v9, %v121_v4  ;;  %v125_v14 = vmin.f32 %v123_v11, %v124_v5  ;;  %v132_v15 = vmul.f32 4.0, %v131_v6  ;;  %v127_v19 = vmax.f32 %v126_v12, 0.0  ;;  %v52_v39 = vpop.permute.xlu0 %51 }
  0x8e   :  { %v147_v31 = vadd.f32 1e-06, %v50_v30  ;;  %v53_v8 = vadd.f32 %v52_v39, %v250_v10 }
  0x8f   :  { %v128_v18 = vsub.f32 %v125_v14, %v122_v13  ;;  %v135_v21 = vadd.f32 %v134_v16, %v132_v15 }
  0x90   :  { %v56_v43 = vadd.f32 %v55_v41, %v53_v8 }
  0x91   :  { %v129_v20 = vmax.f32 %v128_v18, 0.0  ;;  %v58_v45 = vpop.permute.xlu0 %57 }
  0x92   :  { %v59_v49 = vadd.f32 %v58_v45, %v56_v43 }
  0x93   :  { %v130_v22 = vmul.f32 %v129_v20, %v127_v19 }
  0x95   :  { %v136_v24 = vsub.f32 %v135_v21, %v130_v22 }
  0x97   :  { %v137_v26 = vmax.f32 %v136_v24, 1e-06 }
  0x99   :  { %185 = vrcp.f32 %v137_v26 }
  0x9a   :  { %187 = vrcp.f32 %v147_v31 }
  0xa3   :  { %v186_v32 = vpop.eup %185 }
  0xa4   :  { %v139_v33 = vmul.f32 %v186_v32, %v137_v26  ;;  %v188_v38 = vpop.eup %187 }
  0xa5   :  { %v149_v40 = vmul.f32 %v188_v38, %v147_v31 }
  0xa6   :  { %v140_v34 = vsub.f32 2.0, %v139_v33 }
  0xa7   :  { %v150_v42 = vsub.f32 2.0, %v149_v40 }
  0xa8   :  { %v141_v35 = vmul.f32 %v186_v32, %v140_v34 }
  0xa9   :  { %v151_v47 = vmul.f32 %v188_v38, %v150_v42 }
  0xaa   :  { %v142_v36 = vmul.f32 %v141_v35, %v130_v22 }
  0xac   :  { %v143_v37 = vmax.f32 %v142_v36, 1e-06 }
  0xae   :  { %189 = vlog2.f32 %v143_v37 }
  0xb8   :  { %v190_v44 = vpop.eup %189 }
  0xb9   :  { %v145_v46 = vmul.f32 0.6931472, %v190_v44 }
  0xbb   :  { %v146_v48 = vsub.f32 0.0, %v145_v46 }
  0xbd   :  { %v152_v50 = vmul.f32 %v151_v47, %v146_v48 }
  0xbf   :  { %v153_v51 = vmul.f32 %v152_v50, %v59_v49 }
  0xc1   :  { %v154_v52 = vsel %vm255_vm3, %v153_v51, 0.0 }
  0xc2   :  { %161 = vst [vmem:[%s275_s4] sm:$0xf] %v154_v52 }

</bundles_post_ra>
